<compile_context>
chip_gen: v7x
topology: tpu7x:2x2x1
jax: 0.10.0
libtpu: 0.0.40
codegen_flags: <defaults>
</compile_context>

<pallas_src>
import functools

import jax
import jax.numpy as jnp
from jax import lax
from jax.experimental import pallas as pl
from jax.experimental.pallas import tpu as pltpu


def _round_up(x, m):
    return ((x + m - 1) // m) * m


def _rd_ode_kernel(coef_ref, x0_ref, lt_ref, out_ref, *, total_steps, dt):
    """Integrate dx/dt = x @ (-diff * L^T) + reac * x * (1 - x) with RK4.

    coef_ref : SMEM f32[2]                  -> [diff, reac]
    x0_ref   : VMEM f32[B_blk, N_pad]       batch block of initial state
    lt_ref   : VMEM {f32|bf16}[N_pad,N_pad] Laplacian, transposed
    out_ref  : VMEM f32[B_blk, N_pad]       final state for this batch block
    """
    diff = coef_ref[0]
    reac = coef_ref[1]

    # Fold -diff into the (transposed) Laplacian once, before the time loop.
    lt_dtype = lt_ref.dtype
    lt_scaled = ((-diff) * lt_ref[...].astype(jnp.float32)).astype(lt_dtype)

    half_dt = 0.5 * dt
    dt_over_6 = dt / 6.0

    def rhs(x):
        diffusion = jnp.dot(
            x.astype(lt_dtype), lt_scaled, preferred_element_type=jnp.float32
        )
        reaction = x * (1.0 - x)
        return diffusion + reac * reaction

    def rk4_step(_, x):
        k1 = rhs(x)
        k2 = rhs(x + half_dt * k1)
        k3 = rhs(x + half_dt * k2)
        k4 = rhs(x + dt * k3)
        return x + dt_over_6 * (k1 + 2.0 * (k2 + k3) + k4)

    x_final = lax.fori_loop(0, total_steps, rk4_step, x0_ref[...], unroll=True)
    out_ref[...] = x_final.astype(out_ref.dtype)


def reaction_diffusion_ode_forward(
    inputs, laplacian, diff_coef, reac_coef,
    *, num_sequence=2, resolution=4, num_output_sequence=-1, ind=None,
    laplacian_dtype=jnp.float32,
):
    """JAX/Pallas equivalent of ReactionDiffusionODE.forward's ODE core.

    inputs    : f32[B, C, N, S]   (batch, channel, node, sequence)
    laplacian : f32[N, N]         graph Laplacian L = D - A
    returns   : f32[1, B, N]      (== odeint(...)[-1:] for num_output_sequence=-1)
    """
    del ind  # unused, as in the PyTorch module
    assert num_output_sequence == -1, "module is used with num_output_sequence=-1"

    # Wrapper-side slice: channel 0, last time step.
    x0 = inputs[:, 0, :, -1].astype(jnp.float32)      # (B, N)
    B, N = x0.shape

    # Lane/sublane-dense padding: N -> mult of 128 (lanes), B -> mult of 8 (sublanes).
    N_pad = _round_up(max(N, 1), 128)
    B_pad = _round_up(max(B, 1), 8)
    B_block = B_pad if B_pad <= 128 else 128
    B_pad = _round_up(B_pad, B_block)

    x0_p = jnp.zeros((B_pad, N_pad), jnp.float32).at[:B, :N].set(x0)
    lt_p = (
        jnp.zeros((N_pad, N_pad), jnp.float32)
        .at[:N, :N]
        .set(jnp.asarray(laplacian, dtype=jnp.float32).T)   # store transposed: x @ L^T
        .astype(laplacian_dtype)
    )

    total_steps = (num_sequence - 1) * resolution          # samp_ts spans [0, 1]
    dt = 1.0 / float(total_steps)
    coefs = jnp.array([diff_coef, reac_coef], dtype=jnp.float32)

    kernel = functools.partial(_rd_ode_kernel, total_steps=total_steps, dt=dt)

    num_b_blocks = B_pad // B_block

    grid_spec = pltpu.PrefetchScalarGridSpec(
        num_scalar_prefetch=0,
        grid=(num_b_blocks,),
        in_specs=[
            pl.BlockSpec(memory_space=pltpu.MemorySpace.SMEM),     # [diff, reac]
            pl.BlockSpec((B_block, N_pad), lambda b: (b, 0)),      # x0 batch block
            pl.BlockSpec((N_pad, N_pad), lambda b: (0, 0)),        # L^T (shared)
        ],
        out_specs=pl.BlockSpec((B_block, N_pad), lambda b: (b, 0)),
    )

    # Raise the scoped-VMEM cap only when the (double-buffered) Laplacian needs it
    # (matters on v7x, whose default scoped limit is 32 MiB of 64 MiB VMEM).
    lt_bytes = N_pad * N_pad * jnp.dtype(laplacian_dtype).itemsize
    x_bytes = B_block * N_pad * 4
    vmem_need = 2 * lt_bytes + 6 * x_bytes + (2 << 20)
    vmem_limit = None if vmem_need <= (32 << 20) else int(min(vmem_need, 120 << 20))

    out_padded = pl.pallas_call(
        kernel,
        grid_spec=grid_spec,
        out_shape=jax.ShapeDtypeStruct((B_pad, N_pad), jnp.float32),
        compiler_params=pltpu.CompilerParams(
            dimension_semantics=("parallel",),     # independent batch blocks
            vmem_limit_bytes=vmem_limit,
        ),
    )(coefs, x0_p, lt_p)

    # Strip padding and add the leading time axis (cheap metadata in the wrapper).
    return out_padded[:B, :N][None]


def _reference_forward(inputs, laplacian, diff_coef, reac_coef,
                       *, num_sequence=2, resolution=4):
    """Pure-JAX RK4 reference for correctness checking."""
    x = inputs[:, 0, :, -1].astype(jnp.float32)
    total_steps = (num_sequence - 1) * resolution
    dt = 1.0 / float(total_steps)
    L = jnp.asarray(laplacian, dtype=jnp.float32)

    def rhs(x):
        return -diff_coef * (x @ L.T) + reac_coef * x * (1.0 - x)

    for _ in range(total_steps):
        k1 = rhs(x)
        k2 = rhs(x + 0.5 * dt * k1)
        k3 = rhs(x + 0.5 * dt * k2)
        k4 = rhs(x + dt * k3)
        x = x + (dt / 6.0) * (k1 + 2.0 * k2 + 2.0 * k3 + k4)
    return x[None]


def _build_ring_laplacian(num_node):
    """Deterministic synthetic graph (ring + chords) replacing the CSV adjacency."""
    a = jnp.zeros((num_node, num_node), dtype=jnp.float32)
    idx = jnp.arange(num_node)
    a = a.at[idx, (idx + 1) % num_node].set(1.0)
    a = a.at[(idx + 1) % num_node, idx].set(1.0)
    a = a.at[idx, (idx + 3) % num_node].set(1.0)    # a few chord edges
    a = a.at[(idx + 3) % num_node, idx].set(1.0)
    deg = jnp.diag(jnp.sum(a, axis=1))
    return deg - a                                   # L = D - A


if __name__ == "__main__":
    # Small shapes consistent with the module's forward:
    # inputs: (batch, channel, num_node, num_sequence_in)
    B, C, N, S = 2, 4, 16, 8
    key = jax.random.PRNGKey(0)
    inputs = jax.random.uniform(key, (B, C, N, S), dtype=jnp.float32)

    laplacian = _build_ring_laplacian(N)
    diff_coef = 0.1   # deterministic "learned" diffusion coefficient
    reac_coef = 0.5   # deterministic "learned" reaction coefficient

    out = reaction_diffusion_ode_forward(
        inputs, laplacian, diff_coef, reac_coef,
        num_sequence=2, resolution=4, num_output_sequence=-1, ind=None,
    )
    out = jax.block_until_ready(out)

    assert out.shape == (1, B, N), out.shape
    assert bool(jnp.all(jnp.isfinite(out)))

    ref = _reference_forward(inputs, laplacian, diff_coef, reac_coef,
                             num_sequence=2, resolution=4)
    assert bool(jnp.allclose(out, ref, rtol=1e-5, atol=1e-5)), (
        float(jnp.max(jnp.abs(out - ref))))

    print("KERNEL_OK")
</pallas_src>

<mosaic_0001>
module attributes {stable_mosaic.version = 11 : i64} {
  func.func @_rd_ode_kernel(%arg0: i32, %arg1: memref<2xf32, #tpu.memory_space<smem>>, %arg2: memref<8x128xf32, #tpu.memory_space<vmem>>, %arg3: memref<128x128xf32, #tpu.memory_space<vmem>>, %arg4: memref<8x128xf32, #tpu.memory_space<vmem>>) attributes {dimension_semantics = [#tpu.dimension_semantics<parallel>], iteration_bounds = array<i64: 1>, scalar_prefetch = 0 : i64, scratch_operands = 0 : i64, tpu.core_type = #tpu.core_type<tc>, window_params = [{transform_indices = @transform_0, window_bounds = array<i64: 2>}, {transform_indices = @transform_1, window_bounds = array<i64: 8, 128>}, {pipeline_mode = #tpu.pipeline_mode<synchronous>, transform_indices = @transform_2, window_bounds = array<i64: 128, 128>}, {transform_indices = @transform_3, window_bounds = array<i64: 8, 128>}]} {
    %c0 = arith.constant 0 : index
    %0 = memref.load %arg1[%c0] : memref<2xf32, #tpu.memory_space<smem>>
    %c1 = arith.constant 1 : index
    %1 = memref.load %arg1[%c1] : memref<2xf32, #tpu.memory_space<smem>>
    %cst = arith.constant 0.000000e+00 : f32
    %2 = arith.subf %cst, %0 : f32
    %c0_0 = arith.constant 0 : index
    %c0_1 = arith.constant 0 : index
    %3 = vector.load %arg3[%c0_0, %c0_1] : memref<128x128xf32, #tpu.memory_space<vmem>>, vector<128x128xf32>
    %4 = vector.broadcast %2 : f32 to vector<128x128xf32>
    %5 = arith.mulf %4, %3 : vector<128x128xf32>
    %c0_2 = arith.constant 0 : index
    %c0_3 = arith.constant 0 : index
    %6 = vector.load %arg2[%c0_2, %c0_3] : memref<8x128xf32, #tpu.memory_space<vmem>>, vector<8x128xf32>
    %c0_i32 = arith.constant 0 : i32
    %cst_4 = arith.constant dense<0.000000e+00> : vector<8x128xf32>
    %7 = tpu.matmul %6, %5, %cst_4 {dimension_numbers = #tpu.dot_dimension_numbers<[1], [0], [0], [1], [0, 0, 1, 1], [], []>} : vector<8x128xf32>, vector<128x128xf32>, vector<8x128xf32> -> vector<8x128xf32>
    %cst_5 = arith.constant 1.000000e+00 : f32
    %8 = vector.broadcast %cst_5 : f32 to vector<8x128xf32>
    %9 = arith.subf %8, %6 : vector<8x128xf32>
    %10 = arith.mulf %6, %9 : vector<8x128xf32>
    %11 = vector.broadcast %1 : f32 to vector<8x128xf32>
    %12 = arith.mulf %11, %10 : vector<8x128xf32>
    %13 = arith.addf %7, %12 : vector<8x128xf32>
    %cst_6 = arith.constant 1.250000e-01 : f32
    %14 = vector.broadcast %cst_6 : f32 to vector<8x128xf32>
    %15 = arith.mulf %14, %13 : vector<8x128xf32>
    %16 = arith.addf %6, %15 : vector<8x128xf32>
    %cst_7 = arith.constant dense<0.000000e+00> : vector<8x128xf32>
    %17 = tpu.matmul %16, %5, %cst_7 {dimension_numbers = #tpu.dot_dimension_numbers<[1], [0], [0], [1], [0, 0, 1, 1], [], []>} : vector<8x128xf32>, vector<128x128xf32>, vector<8x128xf32> -> vector<8x128xf32>
    %cst_8 = arith.constant 1.000000e+00 : f32
    %18 = vector.broadcast %cst_8 : f32 to vector<8x128xf32>
    %19 = arith.subf %18, %16 : vector<8x128xf32>
    %20 = arith.mulf %16, %19 : vector<8x128xf32>
    %21 = vector.broadcast %1 : f32 to vector<8x128xf32>
    %22 = arith.mulf %21, %20 : vector<8x128xf32>
    %23 = arith.addf %17, %22 : vector<8x128xf32>
    %cst_9 = arith.constant 1.250000e-01 : f32
    %24 = vector.broadcast %cst_9 : f32 to vector<8x128xf32>
    %25 = arith.mulf %24, %23 : vector<8x128xf32>
    %26 = arith.addf %6, %25 : vector<8x128xf32>
    %cst_10 = arith.constant dense<0.000000e+00> : vector<8x128xf32>
    %27 = tpu.matmul %26, %5, %cst_10 {dimension_numbers = #tpu.dot_dimension_numbers<[1], [0], [0], [1], [0, 0, 1, 1], [], []>} : vector<8x128xf32>, vector<128x128xf32>, vector<8x128xf32> -> vector<8x128xf32>
    %cst_11 = arith.constant 1.000000e+00 : f32
    %28 = vector.broadcast %cst_11 : f32 to vector<8x128xf32>
    %29 = arith.subf %28, %26 : vector<8x128xf32>
    %30 = arith.mulf %26, %29 : vector<8x128xf32>
    %31 = vector.broadcast %1 : f32 to vector<8x128xf32>
    %32 = arith.mulf %31, %30 : vector<8x128xf32>
    %33 = arith.addf %27, %32 : vector<8x128xf32>
    %cst_12 = arith.constant 2.500000e-01 : f32
    %34 = vector.broadcast %cst_12 : f32 to vector<8x128xf32>
    %35 = arith.mulf %34, %33 : vector<8x128xf32>
    %36 = arith.addf %6, %35 : vector<8x128xf32>
    %cst_13 = arith.constant dense<0.000000e+00> : vector<8x128xf32>
    %37 = tpu.matmul %36, %5, %cst_13 {dimension_numbers = #tpu.dot_dimension_numbers<[1], [0], [0], [1], [0, 0, 1, 1], [], []>} : vector<8x128xf32>, vector<128x128xf32>, vector<8x128xf32> -> vector<8x128xf32>
    %cst_14 = arith.constant 1.000000e+00 : f32
    %38 = vector.broadcast %cst_14 : f32 to vector<8x128xf32>
    %39 = arith.subf %38, %36 : vector<8x128xf32>
    %40 = arith.mulf %36, %39 : vector<8x128xf32>
    %41 = vector.broadcast %1 : f32 to vector<8x128xf32>
    %42 = arith.mulf %41, %40 : vector<8x128xf32>
    %43 = arith.addf %37, %42 : vector<8x128xf32>
    %44 = arith.addf %23, %33 : vector<8x128xf32>
    %cst_15 = arith.constant 2.000000e+00 : f32
    %45 = vector.broadcast %cst_15 : f32 to vector<8x128xf32>
    %46 = arith.mulf %45, %44 : vector<8x128xf32>
    %47 = arith.addf %13, %46 : vector<8x128xf32>
    %48 = arith.addf %47, %43 : vector<8x128xf32>
    %cst_16 = arith.constant 0.0416666679 : f32
    %49 = vector.broadcast %cst_16 : f32 to vector<8x128xf32>
    %50 = arith.mulf %49, %48 : vector<8x128xf32>
    %51 = arith.addf %6, %50 : vector<8x128xf32>
    %c1_i32 = arith.constant 1 : i32
    %cst_17 = arith.constant dense<0.000000e+00> : vector<8x128xf32>
    %52 = tpu.matmul %51, %5, %cst_17 {dimension_numbers = #tpu.dot_dimension_numbers<[1], [0], [0], [1], [0, 0, 1, 1], [], []>} : vector<8x128xf32>, vector<128x128xf32>, vector<8x128xf32> -> vector<8x128xf32>
    %cst_18 = arith.constant 1.000000e+00 : f32
    %53 = vector.broadcast %cst_18 : f32 to vector<8x128xf32>
    %54 = arith.subf %53, %51 : vector<8x128xf32>
    %55 = arith.mulf %51, %54 : vector<8x128xf32>
    %56 = vector.broadcast %1 : f32 to vector<8x128xf32>
    %57 = arith.mulf %56, %55 : vector<8x128xf32>
    %58 = arith.addf %52, %57 : vector<8x128xf32>
    %cst_19 = arith.constant 1.250000e-01 : f32
    %59 = vector.broadcast %cst_19 : f32 to vector<8x128xf32>
    %60 = arith.mulf %59, %58 : vector<8x128xf32>
    %61 = arith.addf %51, %60 : vector<8x128xf32>
    %cst_20 = arith.constant dense<0.000000e+00> : vector<8x128xf32>
    %62 = tpu.matmul %61, %5, %cst_20 {dimension_numbers = #tpu.dot_dimension_numbers<[1], [0], [0], [1], [0, 0, 1, 1], [], []>} : vector<8x128xf32>, vector<128x128xf32>, vector<8x128xf32> -> vector<8x128xf32>
    %cst_21 = arith.constant 1.000000e+00 : f32
    %63 = vector.broadcast %cst_21 : f32 to vector<8x128xf32>
    %64 = arith.subf %63, %61 : vector<8x128xf32>
    %65 = arith.mulf %61, %64 : vector<8x128xf32>
    %66 = vector.broadcast %1 : f32 to vector<8x128xf32>
    %67 = arith.mulf %66, %65 : vector<8x128xf32>
    %68 = arith.addf %62, %67 : vector<8x128xf32>
    %cst_22 = arith.constant 1.250000e-01 : f32
    %69 = vector.broadcast %cst_22 : f32 to vector<8x128xf32>
    %70 = arith.mulf %69, %68 : vector<8x128xf32>
    %71 = arith.addf %51, %70 : vector<8x128xf32>
    %cst_23 = arith.constant dense<0.000000e+00> : vector<8x128xf32>
    %72 = tpu.matmul %71, %5, %cst_23 {dimension_numbers = #tpu.dot_dimension_numbers<[1], [0], [0], [1], [0, 0, 1, 1], [], []>} : vector<8x128xf32>, vector<128x128xf32>, vector<8x128xf32> -> vector<8x128xf32>
    %cst_24 = arith.constant 1.000000e+00 : f32
    %73 = vector.broadcast %cst_24 : f32 to vector<8x128xf32>
    %74 = arith.subf %73, %71 : vector<8x128xf32>
    %75 = arith.mulf %71, %74 : vector<8x128xf32>
    %76 = vector.broadcast %1 : f32 to vector<8x128xf32>
    %77 = arith.mulf %76, %75 : vector<8x128xf32>
    %78 = arith.addf %72, %77 : vector<8x128xf32>
    %cst_25 = arith.constant 2.500000e-01 : f32
    %79 = vector.broadcast %cst_25 : f32 to vector<8x128xf32>
    %80 = arith.mulf %79, %78 : vector<8x128xf32>
    %81 = arith.addf %51, %80 : vector<8x128xf32>
    %cst_26 = arith.constant dense<0.000000e+00> : vector<8x128xf32>
    %82 = tpu.matmul %81, %5, %cst_26 {dimension_numbers = #tpu.dot_dimension_numbers<[1], [0], [0], [1], [0, 0, 1, 1], [], []>} : vector<8x128xf32>, vector<128x128xf32>, vector<8x128xf32> -> vector<8x128xf32>
    %cst_27 = arith.constant 1.000000e+00 : f32
    %83 = vector.broadcast %cst_27 : f32 to vector<8x128xf32>
    %84 = arith.subf %83, %81 : vector<8x128xf32>
    %85 = arith.mulf %81, %84 : vector<8x128xf32>
    %86 = vector.broadcast %1 : f32 to vector<8x128xf32>
    %87 = arith.mulf %86, %85 : vector<8x128xf32>
    %88 = arith.addf %82, %87 : vector<8x128xf32>
    %89 = arith.addf %68, %78 : vector<8x128xf32>
    %cst_28 = arith.constant 2.000000e+00 : f32
    %90 = vector.broadcast %cst_28 : f32 to vector<8x128xf32>
    %91 = arith.mulf %90, %89 : vector<8x128xf32>
    %92 = arith.addf %58, %91 : vector<8x128xf32>
    %93 = arith.addf %92, %88 : vector<8x128xf32>
    %cst_29 = arith.constant 0.0416666679 : f32
    %94 = vector.broadcast %cst_29 : f32 to vector<8x128xf32>
    %95 = arith.mulf %94, %93 : vector<8x128xf32>
    %96 = arith.addf %51, %95 : vector<8x128xf32>
    %c2_i32 = arith.constant 2 : i32
    %cst_30 = arith.constant dense<0.000000e+00> : vector<8x128xf32>
    %97 = tpu.matmul %96, %5, %cst_30 {dimension_numbers = #tpu.dot_dimension_numbers<[1], [0], [0], [1], [0, 0, 1, 1], [], []>} : vector<8x128xf32>, vector<128x128xf32>, vector<8x128xf32> -> vector<8x128xf32>
    %cst_31 = arith.constant 1.000000e+00 : f32
    %98 = vector.broadcast %cst_31 : f32 to vector<8x128xf32>
    %99 = arith.subf %98, %96 : vector<8x128xf32>
    %100 = arith.mulf %96, %99 : vector<8x128xf32>
    %101 = vector.broadcast %1 : f32 to vector<8x128xf32>
    %102 = arith.mulf %101, %100 : vector<8x128xf32>
    %103 = arith.addf %97, %102 : vector<8x128xf32>
    %cst_32 = arith.constant 1.250000e-01 : f32
    %104 = vector.broadcast %cst_32 : f32 to vector<8x128xf32>
    %105 = arith.mulf %104, %103 : vector<8x128xf32>
    %106 = arith.addf %96, %105 : vector<8x128xf32>
    %cst_33 = arith.constant dense<0.000000e+00> : vector<8x128xf32>
    %107 = tpu.matmul %106, %5, %cst_33 {dimension_numbers = #tpu.dot_dimension_numbers<[1], [0], [0], [1], [0, 0, 1, 1], [], []>} : vector<8x128xf32>, vector<128x128xf32>, vector<8x128xf32> -> vector<8x128xf32>
    %cst_34 = arith.constant 1.000000e+00 : f32
    %108 = vector.broadcast %cst_34 : f32 to vector<8x128xf32>
    %109 = arith.subf %108, %106 : vector<8x128xf32>
    %110 = arith.mulf %106, %109 : vector<8x128xf32>
    %111 = vector.broadcast %1 : f32 to vector<8x128xf32>
    %112 = arith.mulf %111, %110 : vector<8x128xf32>
    %113 = arith.addf %107, %112 : vector<8x128xf32>
    %cst_35 = arith.constant 1.250000e-01 : f32
    %114 = vector.broadcast %cst_35 : f32 to vector<8x128xf32>
    %115 = arith.mulf %114, %113 : vector<8x128xf32>
    %116 = arith.addf %96, %115 : vector<8x128xf32>
    %cst_36 = arith.constant dense<0.000000e+00> : vector<8x128xf32>
    %117 = tpu.matmul %116, %5, %cst_36 {dimension_numbers = #tpu.dot_dimension_numbers<[1], [0], [0], [1], [0, 0, 1, 1], [], []>} : vector<8x128xf32>, vector<128x128xf32>, vector<8x128xf32> -> vector<8x128xf32>
    %cst_37 = arith.constant 1.000000e+00 : f32
    %118 = vector.broadcast %cst_37 : f32 to vector<8x128xf32>
    %119 = arith.subf %118, %116 : vector<8x128xf32>
    %120 = arith.mulf %116, %119 : vector<8x128xf32>
    %121 = vector.broadcast %1 : f32 to vector<8x128xf32>
    %122 = arith.mulf %121, %120 : vector<8x128xf32>
    %123 = arith.addf %117, %122 : vector<8x128xf32>
    %cst_38 = arith.constant 2.500000e-01 : f32
    %124 = vector.broadcast %cst_38 : f32 to vector<8x128xf32>
    %125 = arith.mulf %124, %123 : vector<8x128xf32>
    %126 = arith.addf %96, %125 : vector<8x128xf32>
    %cst_39 = arith.constant dense<0.000000e+00> : vector<8x128xf32>
    %127 = tpu.matmul %126, %5, %cst_39 {dimension_numbers = #tpu.dot_dimension_numbers<[1], [0], [0], [1], [0, 0, 1, 1], [], []>} : vector<8x128xf32>, vector<128x128xf32>, vector<8x128xf32> -> vector<8x128xf32>
    %cst_40 = arith.constant 1.000000e+00 : f32
    %128 = vector.broadcast %cst_40 : f32 to vector<8x128xf32>
    %129 = arith.subf %128, %126 : vector<8x128xf32>
    %130 = arith.mulf %126, %129 : vector<8x128xf32>
    %131 = vector.broadcast %1 : f32 to vector<8x128xf32>
    %132 = arith.mulf %131, %130 : vector<8x128xf32>
    %133 = arith.addf %127, %132 : vector<8x128xf32>
    %134 = arith.addf %113, %123 : vector<8x128xf32>
    %cst_41 = arith.constant 2.000000e+00 : f32
    %135 = vector.broadcast %cst_41 : f32 to vector<8x128xf32>
    %136 = arith.mulf %135, %134 : vector<8x128xf32>
    %137 = arith.addf %103, %136 : vector<8x128xf32>
    %138 = arith.addf %137, %133 : vector<8x128xf32>
    %cst_42 = arith.constant 0.0416666679 : f32
    %139 = vector.broadcast %cst_42 : f32 to vector<8x128xf32>
    %140 = arith.mulf %139, %138 : vector<8x128xf32>
    %141 = arith.addf %96, %140 : vector<8x128xf32>
    %c3_i32 = arith.constant 3 : i32
    %cst_43 = arith.constant dense<0.000000e+00> : vector<8x128xf32>
    %142 = tpu.matmul %141, %5, %cst_43 {dimension_numbers = #tpu.dot_dimension_numbers<[1], [0], [0], [1], [0, 0, 1, 1], [], []>} : vector<8x128xf32>, vector<128x128xf32>, vector<8x128xf32> -> vector<8x128xf32>
    %cst_44 = arith.constant 1.000000e+00 : f32
    %143 = vector.broadcast %cst_44 : f32 to vector<8x128xf32>
    %144 = arith.subf %143, %141 : vector<8x128xf32>
    %145 = arith.mulf %141, %144 : vector<8x128xf32>
    %146 = vector.broadcast %1 : f32 to vector<8x128xf32>
    %147 = arith.mulf %146, %145 : vector<8x128xf32>
    %148 = arith.addf %142, %147 : vector<8x128xf32>
    %cst_45 = arith.constant 1.250000e-01 : f32
    %149 = vector.broadcast %cst_45 : f32 to vector<8x128xf32>
    %150 = arith.mulf %149, %148 : vector<8x128xf32>
    %151 = arith.addf %141, %150 : vector<8x128xf32>
    %cst_46 = arith.constant dense<0.000000e+00> : vector<8x128xf32>
    %152 = tpu.matmul %151, %5, %cst_46 {dimension_numbers = #tpu.dot_dimension_numbers<[1], [0], [0], [1], [0, 0, 1, 1], [], []>} : vector<8x128xf32>, vector<128x128xf32>, vector<8x128xf32> -> vector<8x128xf32>
    %cst_47 = arith.constant 1.000000e+00 : f32
    %153 = vector.broadcast %cst_47 : f32 to vector<8x128xf32>
    %154 = arith.subf %153, %151 : vector<8x128xf32>
    %155 = arith.mulf %151, %154 : vector<8x128xf32>
    %156 = vector.broadcast %1 : f32 to vector<8x128xf32>
    %157 = arith.mulf %156, %155 : vector<8x128xf32>
    %158 = arith.addf %152, %157 : vector<8x128xf32>
    %cst_48 = arith.constant 1.250000e-01 : f32
    %159 = vector.broadcast %cst_48 : f32 to vector<8x128xf32>
    %160 = arith.mulf %159, %158 : vector<8x128xf32>
    %161 = arith.addf %141, %160 : vector<8x128xf32>
    %cst_49 = arith.constant dense<0.000000e+00> : vector<8x128xf32>
    %162 = tpu.matmul %161, %5, %cst_49 {dimension_numbers = #tpu.dot_dimension_numbers<[1], [0], [0], [1], [0, 0, 1, 1], [], []>} : vector<8x128xf32>, vector<128x128xf32>, vector<8x128xf32> -> vector<8x128xf32>
    %cst_50 = arith.constant 1.000000e+00 : f32
    %163 = vector.broadcast %cst_50 : f32 to vector<8x128xf32>
    %164 = arith.subf %163, %161 : vector<8x128xf32>
    %165 = arith.mulf %161, %164 : vector<8x128xf32>
    %166 = vector.broadcast %1 : f32 to vector<8x128xf32>
    %167 = arith.mulf %166, %165 : vector<8x128xf32>
    %168 = arith.addf %162, %167 : vector<8x128xf32>
    %cst_51 = arith.constant 2.500000e-01 : f32
    %169 = vector.broadcast %cst_51 : f32 to vector<8x128xf32>
    %170 = arith.mulf %169, %168 : vector<8x128xf32>
    %171 = arith.addf %141, %170 : vector<8x128xf32>
    %cst_52 = arith.constant dense<0.000000e+00> : vector<8x128xf32>
    %172 = tpu.matmul %171, %5, %cst_52 {dimension_numbers = #tpu.dot_dimension_numbers<[1], [0], [0], [1], [0, 0, 1, 1], [], []>} : vector<8x128xf32>, vector<128x128xf32>, vector<8x128xf32> -> vector<8x128xf32>
    %cst_53 = arith.constant 1.000000e+00 : f32
    %173 = vector.broadcast %cst_53 : f32 to vector<8x128xf32>
    %174 = arith.subf %173, %171 : vector<8x128xf32>
    %175 = arith.mulf %171, %174 : vector<8x128xf32>
    %176 = vector.broadcast %1 : f32 to vector<8x128xf32>
    %177 = arith.mulf %176, %175 : vector<8x128xf32>
    %178 = arith.addf %172, %177 : vector<8x128xf32>
    %179 = arith.addf %158, %168 : vector<8x128xf32>
    %cst_54 = arith.constant 2.000000e+00 : f32
    %180 = vector.broadcast %cst_54 : f32 to vector<8x128xf32>
    %181 = arith.mulf %180, %179 : vector<8x128xf32>
    %182 = arith.addf %148, %181 : vector<8x128xf32>
    %183 = arith.addf %182, %178 : vector<8x128xf32>
    %cst_55 = arith.constant 0.0416666679 : f32
    %184 = vector.broadcast %cst_55 : f32 to vector<8x128xf32>
    %185 = arith.mulf %184, %183 : vector<8x128xf32>
    %186 = arith.addf %141, %185 : vector<8x128xf32>
    %c0_56 = arith.constant 0 : index
    %c0_57 = arith.constant 0 : index
    %187 = vector.load %arg4[%c0_56, %c0_57] : memref<8x128xf32, #tpu.memory_space<vmem>>, vector<8x128xf32>
    tpu.vector_store %arg4[%c0_56, %c0_57], %186 {strides = array<i32>} : memref<8x128xf32, #tpu.memory_space<vmem>>, vector<8x128xf32>,
    return
  }
  func.func @transform_0(%arg0: i32) -> i32 {
    %c0_i32 = arith.constant 0 : i32
    %c0_i32_0 = arith.constant 0 : i32
    return %c0_i32 : i32
  }
  func.func @transform_1(%arg0: i32) -> (i32, i32) {
    %c0_i32 = arith.constant 0 : i32
    %c0_i32_0 = arith.constant 0 : i32
    return %arg0, %c0_i32 : i32, i32
  }
  func.func @transform_2(%arg0: i32) -> (i32, i32) {
    %c0_i32 = arith.constant 0 : i32
    %c0_i32_0 = arith.constant 0 : i32
    %c0_i32_1 = arith.constant 0 : i32
    return %c0_i32, %c0_i32_0 : i32, i32
  }
  func.func @transform_3(%arg0: i32) -> (i32, i32) {
    %c0_i32 = arith.constant 0 : i32
    %c0_i32_0 = arith.constant 0 : i32
    return %arg0, %c0_i32 : i32, i32
  }
}

</mosaic_0001>

<bundles_post_ra>
// kernel: tpu_custom_call.1
= control target key start
LH: loop header
LB: loop body
LE: loop exit
PB: predicated region body
PF: predicated region fallthrough
CT: control target
= control target key end

     0   :  { %8 = vsyncpa [#allocation5], 0  ;;  %s3081_s0 = inlined_call_operand.hbm [shape: f32[2], index: 0, kind: input, shape index: {}]   ;;  %s3082_s1 = inlined_call_operand.hbm [shape: f32[8,128], index: 1, kind: input, shape index: {}]   ;;  %s3083_s2 = inlined_call_operand.hbm [shape: f32[128,128], index: 2, kind: input, shape index: {}]   ;;  %s3084_s3 = inlined_call_operand.hbm [shape: f32[8,128], index: 3, kind: output, shape index: {}]  }
   0x1   :  { %9 = vsyncpa [#allocation3], 0 }
   0x2   :  { %10 = vsyncpa [#allocation8], 0 }
   0x3   :  { %11 = vsyncpa [#allocation4], 0  ;;  %s2550_s14 = scalar_lea.hbm %s3081_s0, 16 }
   0x4   :  { %p2551_p0 = scmp.ne.s32.totalorder %s3081_s0, %s2550_s14  ;;  %p2554_p1 = scmp.lt.u32.totalorder %s2550_s14, %s3081_s0 }
   0x6   :  { %p2556_p2 = pnand %p2554_p1, %p2551_p0 }
   0x8   :  { %2559 = shalt.err (!%p2556_p2)
}
   0x9   :  { %s2634_s19 = smov [#allocation2]   ;;  %s2635_s22 = smov [#allocation6]  }
   0xa   :  { %19 = dma.hbm_to_smem %s3081_s0, 16, %s2634_s19, [#allocation5]  }
   0xb   :  { %s26_s23 = sshll.u32 %s2635_s22, 4  ;;  %s2636_s24 = smov [#allocation7]   ;;  %s27_s23 = int_to_ptr.vmem [resolvable:$true] %s26_s23 }
   0xc   :  { %s35_s25 = sshll.u32 %s2636_s24, 4  ;;  %s2560_s28 = scalar_lea.hbm %s3082_s1, 128  ;;  %s36_s25 = int_to_ptr.vmem [resolvable:$true] %s35_s25 }
   0xd   :  { %p2561_p3 = scmp.ne.s32.totalorder %s3082_s1, %s2560_s28  ;;  %p2564_p4 = scmp.lt.u32.totalorder %s2560_s28, %s3082_s1 }
   0xf   :  { %p2566_p5 = pnand %p2564_p4, %p2561_p3 }
  0x11   :  { %2569 = shalt.err (!%p2566_p5)
}
  0x12   :  { %s2570_s0 = scalar_lea.vmem %s27_s23, 128  ;;  %p2575_p7 = scmp.lt.s32.totalorder %s27_s23, %s27_s23 }
  0x13   :  { %p2571_p6 = scmp.ne.s32.totalorder %s27_s23, %s2570_s0  ;;  %p2576_p8 = scmp.lt.s32.totalorder %s2570_s0, %s2570_s0 }
  0x15   :  { %p2577_p9 = por %p2576_p8, %p2575_p7 }
  0x17   :  { %p2578_p10 = pnand %p2577_p9, %p2571_p6 }
  0x19   :  { %2581 = shalt.err (!%p2578_p10)
}
  0x1a   :  { %29 = dma.hbm_to_vmem [thread:$0]  %s3082_s1, 128, %s27_s23, [#allocation3]  }
  0x1b   :  { %s2582_s10 = scalar_lea.hbm %s3083_s2, 2048 }
  0x1c   :  { %p2583_p11 = scmp.ne.s32.totalorder %s3083_s2, %s2582_s10  ;;  %p2586_p12 = scmp.lt.u32.totalorder %s2582_s10, %s3083_s2 }
  0x1e   :  { %p2588_p13 = pnand %p2586_p12, %p2583_p11 }
  0x20   :  { %2591 = shalt.err (!%p2588_p13)
}
  0x21   :  { %s2592_s15 = scalar_lea.vmem %s36_s25, 2048  ;;  %p2597_p1 = scmp.lt.s32.totalorder %s36_s25, %s36_s25 }
  0x22   :  { %p2593_p0 = scmp.ne.s32.totalorder %s36_s25, %s2592_s15  ;;  %p2598_p2 = scmp.lt.s32.totalorder %s2592_s15, %s2592_s15 }
  0x24   :  { %p2599_p3 = por %p2598_p2, %p2597_p1 }
  0x26   :  { %p2600_p4 = pnand %p2599_p3, %p2593_p0 }
  0x28   :  { %2603 = shalt.err (!%p2600_p4)
}
  0x29   :  { %s2637_s1 = smov 128   ;;  %s2638_s16 = smov 8  }
  0x2a   :  { %41 = dma.hbm_to_vmem [thread:$0]  %s3083_s2, 2048, %s36_s25, [#allocation8], %s2637_s1, %s2637_s1, %s2638_s16  }
  0x2b   :  { %2626 = dma.done.wait [#allocation5], 16  }
  0x2c   :  { %2627 = vsyncadd [#allocation5], 4294967280 }
  0x2d   :  { %2628 = dma.done.wait [#allocation3], 128  }
  0x2e   :  { %2629 = vsyncadd [#allocation3], 4294967168 }
  0x2f   :  { %2630 = dma.done.wait [#allocation8], 2048  }
  0x30   :  { %2631 = vsyncadd [#allocation8], 4294965248 }
  0x31   :  { %51 = sfence }
  0x32   :  { %s52_s19 = sld [smem:[#allocation2]]  ;;  %v2639_v0 = vmov 0.0|0.0   ;;  %vm2640_vm0 = vmmov 0   ;;  %v2641_v1 = vmov 0.0   ;;  %v55_v2 = vld [vmem:[#allocation7] sm:$0xff]  ;;  %v56_v3 = vld [vmem:[#allocation7 + $0x8] sm:$0xff] }
  0x33   :  { %2157 = vmatprep.subr.bf16.mxu0 %v2639_v0  ;;  %2181 = vmatprep.subr.bf16.mxu1 %v2639_v0  ;;  %v57_v4 = vld [vmem:[#allocation7 + $0x10] sm:$0xff]  ;;  %v58_v5 = vld [vmem:[#allocation7 + $0x18] sm:$0xff]  ;;  %v59_v11 = vld [vmem:[#allocation7 + $0x20] sm:$0xff]  ;;  %s1324_s20 = sld [smem:[#allocation2 + $0x1]]  ;;  %s2642_s21 = smov [#allocation9]  }
  0x34   :  { %1629 = vmatprep.mubr.msk.f32.mxu0 %vm2640_vm0, %v2641_v1  ;;  %1664 = vmatprep.mubr.msk.f32.mxu1 %vm2640_vm0, %v2641_v1  ;;  %v60_v12 = vld [vmem:[#allocation7 + $0x28] sm:$0xff]  ;;  %v61_v17 = vld [vmem:[#allocation7 + $0x30] sm:$0xff]  ;;  %v62_v18 = vld [vmem:[#allocation7 + $0x38] sm:$0xff]  ;;  %s1313_s22 = sshll.u32 %s2642_s21, 4  ;;  %s1314_s22 = int_to_ptr.vmem [resolvable:$true] %s1313_s22 }
  0x35   :  { %v63_v22 = vld [vmem:[#allocation7 + $0x40] sm:$0xff]  ;;  %v64_v23 = vld [vmem:[#allocation7 + $0x48] sm:$0xff]  ;;  %v65_v27 = vld [vmem:[#allocation7 + $0x50] sm:$0xff]  ;;  %s2604_s23 = scalar_lea.vmem %s1314_s22, 128  ;;  %p2609_p6 = scmp.lt.s32.totalorder %s1314_s22, %s1314_s22 }
  0x36   :  { %v66_v28 = vld [vmem:[#allocation7 + $0x58] sm:$0xff]  ;;  %v67_v32 = vld [vmem:[#allocation7 + $0x60] sm:$0xff]  ;;  %v68_v33 = vld [vmem:[#allocation7 + $0x68] sm:$0xff]  ;;  %p2605_p5 = scmp.ne.s32.totalorder %s1314_s22, %s2604_s23  ;;  %p2610_p7 = scmp.lt.s32.totalorder %s2604_s23, %s2604_s23 }
  0x37   :  { %v69_v37 = vld [vmem:[#allocation7 + $0x70] sm:$0xff]  ;;  %v70_v38 = vld [vmem:[#allocation7 + $0x78] sm:$0xff] }
  0x38   :  { %s54_s2 = ssub.f32 0.0, %s52_s19  ;;  %v2750_v43 = vld [vmem:[#allocation6] sm:$0xff]  ;;  %p2611_p8 = por %p2610_p7, %p2609_p6 }
  0x39   :  { %v89_v44 = vsub.f32 1.0, %v2750_v43  ;;  %v2776_v46 = vstv %s1324_s20 }
  0x3a   :  { %v71_v6 = vstv %s54_s2  ;;  %p2612_p9 = pnand %p2611_p8, %p2605_p5 }
  0x3b   :  { %v72_v7 = vmul.f32 %v71_v6, %v55_v2  ;;  %v73_v8 = vmul.f32 %v71_v6, %v56_v3  ;;  %v74_v9 = vmul.f32 %v71_v6, %v57_v4  ;;  %v75_v10 = vmul.f32 %v71_v6, %v58_v5 }
  0x3c   :  { %v76_v15 = vmul.f32 %v71_v6, %v59_v11  ;;  %v77_v16 = vmul.f32 %v71_v6, %v60_v12  ;;  %v78_v20 = vmul.f32 %v71_v6, %v61_v17  ;;  %v79_v21 = vmul.f32 %v71_v6, %v62_v18 }
  0x3d   :  { %v2705_v13 = vpack.c.bf16 %v73_v8, %v72_v7  ;;  %v2708_v14 = vpack.c.bf16 %v75_v10, %v74_v9  ;;  %v80_v25 = vmul.f32 %v71_v6, %v63_v22  ;;  %v81_v26 = vmul.f32 %v71_v6, %v64_v23 }
  0x3e   :  { %v2714_v19 = vpack.c.bf16 %v77_v16, %v76_v15  ;;  %v2720_v24 = vpack.c.bf16 %v79_v21, %v78_v20  ;;  %v82_v30 = vmul.f32 %v71_v6, %v65_v27  ;;  %v83_v31 = vmul.f32 %v71_v6, %v66_v28 }
  0x3f   :  { %2159 = vmatpush3.bf16.msra.mxu0 %v2705_v13  ;;  %2183 = vmatpush3.bf16.msra.mxu1 %v2705_v13  ;;  %v2726_v29 = vpack.c.bf16 %v81_v26, %v80_v25  ;;  %v84_v35 = vmul.f32 %v71_v6, %v67_v32  ;;  %v85_v36 = vmul.f32 %v71_v6, %v68_v33 }
  0x40   :  { %2160 = vmatprep.subr.bf16.mxu0 %v2639_v0  ;;  %2184 = vmatprep.subr.bf16.mxu1 %v2639_v0  ;;  %v2732_v34 = vpack.c.bf16 %v83_v31, %v82_v30  ;;  %v86_v40 = vmul.f32 %v71_v6, %v69_v37  ;;  %v87_v41 = vmul.f32 %v71_v6, %v70_v38 }
  0x41   :  { %v2738_v39 = vpack.c.bf16 %v85_v36, %v84_v35  ;;  %v90_v45 = vmul.f32 %v89_v44, %v2750_v43 }
  0x42   :  { %v2744_v42 = vpack.c.bf16 %v87_v41, %v86_v40 }
  0x43   :  { %2162 = vmatpush3.bf16.msra.mxu0 %v2708_v14  ;;  %2186 = vmatpush3.bf16.msra.mxu1 %v2708_v14  ;;  %v92_v47 = vmul.f32 %v2776_v46, %v90_v45 }
  0x44   :  { %2163 = vmatprep.subr.bf16.mxu0 %v2639_v0  ;;  %2187 = vmatprep.subr.bf16.mxu1 %v2639_v0 }
  0x47   :  { %2165 = vmatpush3.bf16.msra.mxu0 %v2714_v19  ;;  %2189 = vmatpush3.bf16.msra.mxu1 %v2714_v19 }
  0x48   :  { %2166 = vmatprep.subr.bf16.mxu0 %v2639_v0  ;;  %2190 = vmatprep.subr.bf16.mxu1 %v2639_v0 }
  0x4b   :  { %2168 = vmatpush3.bf16.msra.mxu0 %v2720_v24  ;;  %2192 = vmatpush3.bf16.msra.mxu1 %v2720_v24 }
  0x4c   :  { %2169 = vmatprep.subr.bf16.mxu0 %v2639_v0  ;;  %2193 = vmatprep.subr.bf16.mxu1 %v2639_v0 }
  0x4f   :  { %2171 = vmatpush3.bf16.msra.mxu0 %v2726_v29  ;;  %2195 = vmatpush3.bf16.msra.mxu1 %v2726_v29 }
  0x50   :  { %2172 = vmatprep.subr.bf16.mxu0 %v2639_v0  ;;  %2196 = vmatprep.subr.bf16.mxu1 %v2639_v0 }
  0x53   :  { %2174 = vmatpush3.bf16.msra.mxu0 %v2732_v34  ;;  %2198 = vmatpush3.bf16.msra.mxu1 %v2732_v34 }
  0x54   :  { %2175 = vmatprep.subr.bf16.mxu0 %v2639_v0  ;;  %2199 = vmatprep.subr.bf16.mxu1 %v2639_v0 }
  0x57   :  { %2177 = vmatpush3.bf16.msra.mxu0 %v2738_v39  ;;  %2201 = vmatpush3.bf16.msra.mxu1 %v2738_v39 }
  0x58   :  { %2178 = vmatprep.subr.bf16.mxu0 %v2639_v0  ;;  %2202 = vmatprep.subr.bf16.mxu1 %v2639_v0 }
  0x5b   :  { %2180 = vmatpush3.bf16.msra.mxu0 %v2744_v42  ;;  %2204 = vmatpush3.bf16.msra.mxu1 %v2744_v42 }
  0x5c   :  { %2205 = vmatprep.subr.bf16.mxu0 %v2639_v0  ;;  %2229 = vmatprep.subr.bf16.mxu1 %v2639_v0 }
  0x5e   :  { %1630 = vmatmul.mubr.f32.vlgmr.msra.gmra.mrb[0].mxu0 %v2750_v43 }
  0x5f   :  { %2207 = vmatpush3.bf16.msra.mxu0 %v2705_v13  ;;  %1699 = vmatprep.mubr.msk.f32.mxu0 %vm2640_vm0, %v2641_v1 }
  0x60   :  { %2208 = vmatprep.subr.bf16.mxu0 %v2639_v0 }
  0x63   :  { %2210 = vmatpush3.bf16.msra.mxu0 %v2708_v14 }
  0x64   :  { %2211 = vmatprep.subr.bf16.mxu0 %v2639_v0 }
  0x67   :  { %2213 = vmatpush3.bf16.msra.mxu0 %v2714_v19 }
  0x68   :  { %2214 = vmatprep.subr.bf16.mxu0 %v2639_v0 }
  0x6b   :  { %2216 = vmatpush3.bf16.msra.mxu0 %v2720_v24 }
  0x6c   :  { %2217 = vmatprep.subr.bf16.mxu0 %v2639_v0 }
  0x6f   :  { %2219 = vmatpush3.bf16.msra.mxu0 %v2726_v29 }
  0x70   :  { %2220 = vmatprep.subr.bf16.mxu0 %v2639_v0 }
  0x73   :  { %2222 = vmatpush3.bf16.msra.mxu0 %v2732_v34 }
  0x74   :  { %2223 = vmatprep.subr.bf16.mxu0 %v2639_v0 }
  0x77   :  { %2225 = vmatpush3.bf16.msra.mxu0 %v2738_v39 }
  0x78   :  { %2226 = vmatprep.subr.bf16.mxu0 %v2639_v0 }
  0x7b   :  { %2228 = vmatpush3.bf16.msra.mxu0 %v2744_v42 }
  0x7c   :  { %2253 = vmatprep.subr.bf16.mxu0 %v2639_v0 }
 0x131   :  { %v159_v48 = vpop.f32.mrb[0].mxu0 }
 0x132   :  { %v2779_v49 = vadd.f32 %v159_v48, %v92_v47  ;;  %v1631_v50 = vpop.f32.mrb[1].mxu0 }
 0x134   :  { %v163_v51 = vmul.f32 0.125, %v2779_v49 }
 0x136   :  { %v164_v52 = vadd.f32 %v163_v51, %v2750_v43 }
 0x138   :  { %1665 = vmatmul.mubr.f32.vlgmr.msra.gmra.mrb[0].mxu1 %v164_v52  ;;  %v165_v53 = vsub.f32 1.0, %v164_v52 }
 0x139   :  { %2231 = vmatpush3.bf16.msra.mxu1 %v2705_v13  ;;  %1734 = vmatprep.mubr.msk.f32.mxu1 %vm2640_vm0, %v2641_v1 }
 0x13a   :  { %2232 = vmatprep.subr.bf16.mxu1 %v2639_v0  ;;  %v166_v54 = vmul.f32 %v165_v53, %v164_v52 }
 0x13c   :  { %v167_v55 = vmul.f32 %v166_v54, %v2776_v46 }
 0x13d   :  { %2234 = vmatpush3.bf16.msra.mxu1 %v2708_v14 }
 0x13e   :  { %2235 = vmatprep.subr.bf16.mxu1 %v2639_v0 }
 0x141   :  { %2237 = vmatpush3.bf16.msra.mxu1 %v2714_v19 }
 0x142   :  { %2238 = vmatprep.subr.bf16.mxu1 %v2639_v0 }
 0x145   :  { %2240 = vmatpush3.bf16.msra.mxu1 %v2720_v24 }
 0x146   :  { %2241 = vmatprep.subr.bf16.mxu1 %v2639_v0 }
 0x149   :  { %2243 = vmatpush3.bf16.msra.mxu1 %v2726_v29 }
 0x14a   :  { %2244 = vmatprep.subr.bf16.mxu1 %v2639_v0 }
 0x14d   :  { %2246 = vmatpush3.bf16.msra.mxu1 %v2732_v34 }
 0x14e   :  { %2247 = vmatprep.subr.bf16.mxu1 %v2639_v0 }
 0x151   :  { %2249 = vmatpush3.bf16.msra.mxu1 %v2738_v39 }
 0x152   :  { %2250 = vmatprep.subr.bf16.mxu1 %v2639_v0 }
 0x155   :  { %2252 = vmatpush3.bf16.msra.mxu1 %v2744_v42 }
 0x156   :  { %2277 = vmatprep.subr.bf16.mxu1 %v2639_v0 }
 0x20b   :  { %v234_v56 = vpop.f32.mrb[0].mxu1 }
 0x20c   :  { %v235_v57 = vadd.f32 %v234_v56, %v167_v55  ;;  %v1666_v58 = vpop.f32.mrb[1].mxu1 }
 0x20e   :  { %v238_v59 = vmul.f32 0.125, %v235_v57 }
 0x210   :  { %v239_v60 = vadd.f32 %v238_v59, %v2750_v43 }
 0x212   :  { %1700 = vmatmul.mubr.f32.vlgmr.msra.gmra.mrb[2].mxu0 %v239_v60  ;;  %v240_v61 = vsub.f32 1.0, %v239_v60 }
 0x213   :  { %2255 = vmatpush3.bf16.msra.mxu0 %v2705_v13  ;;  %1769 = vmatprep.mubr.msk.f32.mxu0 %vm2640_vm0, %v2641_v1 }
 0x214   :  { %2256 = vmatprep.subr.bf16.mxu0 %v2639_v0  ;;  %v241_v62 = vmul.f32 %v240_v61, %v239_v60 }
 0x216   :  { %v242_v63 = vmul.f32 %v241_v62, %v2776_v46 }
 0x217   :  { %2258 = vmatpush3.bf16.msra.mxu0 %v2708_v14 }
 0x218   :  { %2259 = vmatprep.subr.bf16.mxu0 %v2639_v0 }
 0x21b   :  { %2261 = vmatpush3.bf16.msra.mxu0 %v2714_v19 }
 0x21c   :  { %2262 = vmatprep.subr.bf16.mxu0 %v2639_v0 }
 0x21f   :  { %2264 = vmatpush3.bf16.msra.mxu0 %v2720_v24 }
 0x220   :  { %2265 = vmatprep.subr.bf16.mxu0 %v2639_v0 }
 0x223   :  { %2267 = vmatpush3.bf16.msra.mxu0 %v2726_v29 }
 0x224   :  { %2268 = vmatprep.subr.bf16.mxu0 %v2639_v0 }
 0x227   :  { %2270 = vmatpush3.bf16.msra.mxu0 %v2732_v34 }
 0x228   :  { %2271 = vmatprep.subr.bf16.mxu0 %v2639_v0 }
 0x22b   :  { %2273 = vmatpush3.bf16.msra.mxu0 %v2738_v39 }
 0x22c   :  { %2274 = vmatprep.subr.bf16.mxu0 %v2639_v0 }
 0x22f   :  { %2276 = vmatpush3.bf16.msra.mxu0 %v2744_v42 }
 0x230   :  { %2301 = vmatprep.subr.bf16.mxu0 %v2639_v0 }
 0x2e5   :  { %v309_v2 = vpop.f32.mrb[2].mxu0 }
 0x2e6   :  { %v310_v3 = vadd.f32 %v309_v2, %v242_v63  ;;  %v1701_v4 = vpop.f32.mrb[3].mxu0 }
 0x2e8   :  { %v313_v5 = vmul.f32 0.25, %v310_v3  ;;  %v388_v8 = vadd.f32 %v310_v3, %v235_v57 }
 0x2ea   :  { %v314_v6 = vadd.f32 %v313_v5, %v2750_v43  ;;  %v389_v10 = vmul.f32 2.0, %v388_v8 }
 0x2ec   :  { %1735 = vmatmul.mubr.f32.vlgmr.msra.gmra.mrb[2].mxu1 %v314_v6  ;;  %v315_v7 = vsub.f32 1.0, %v314_v6  ;;  %v390_v16 = vadd.f32 %v389_v10, %v2779_v49 }
 0x2ed   :  { %2279 = vmatpush3.bf16.msra.mxu1 %v2705_v13  ;;  %1804 = vmatprep.mubr.msk.f32.mxu1 %vm2640_vm0, %v2641_v1 }
 0x2ee   :  { %2280 = vmatprep.subr.bf16.mxu1 %v2639_v0  ;;  %v316_v9 = vmul.f32 %v315_v7, %v314_v6 }
 0x2f0   :  { %v317_v11 = vmul.f32 %v316_v9, %v2776_v46 }
 0x2f1   :  { %2282 = vmatpush3.bf16.msra.mxu1 %v2708_v14 }
 0x2f2   :  { %2283 = vmatprep.subr.bf16.mxu1 %v2639_v0 }
 0x2f5   :  { %2285 = vmatpush3.bf16.msra.mxu1 %v2714_v19 }
 0x2f6   :  { %2286 = vmatprep.subr.bf16.mxu1 %v2639_v0 }
 0x2f9   :  { %2288 = vmatpush3.bf16.msra.mxu1 %v2720_v24 }
 0x2fa   :  { %2289 = vmatprep.subr.bf16.mxu1 %v2639_v0 }
 0x2fd   :  { %2291 = vmatpush3.bf16.msra.mxu1 %v2726_v29 }
 0x2fe   :  { %2292 = vmatprep.subr.bf16.mxu1 %v2639_v0 }
 0x301   :  { %2294 = vmatpush3.bf16.msra.mxu1 %v2732_v34 }
 0x302   :  { %2295 = vmatprep.subr.bf16.mxu1 %v2639_v0 }
 0x305   :  { %2297 = vmatpush3.bf16.msra.mxu1 %v2738_v39 }
 0x306   :  { %2298 = vmatprep.subr.bf16.mxu1 %v2639_v0 }
 0x309   :  { %2300 = vmatpush3.bf16.msra.mxu1 %v2744_v42 }
 0x30a   :  { %2325 = vmatprep.subr.bf16.mxu1 %v2639_v0 }
 0x3bf   :  { %v384_v12 = vpop.f32.mrb[2].mxu1 }
 0x3c0   :  { %v385_v15 = vadd.f32 %v384_v12, %v317_v11  ;;  %v1736_v17 = vpop.f32.mrb[3].mxu1 }
 0x3c2   :  { %v391_v18 = vadd.f32 %v390_v16, %v385_v15 }
 0x3c4   :  { %v392_v20 = vmul.f32 0.041666668, %v391_v18 }
 0x3c6   :  { %v2844_v21 = vadd.f32 %v392_v20, %v2750_v43 }
 0x3c8   :  { %1770 = vmatmul.mubr.f32.vlgmr.msra.gmra.mrb[4].mxu0 %v2844_v21  ;;  %v394_v22 = vsub.f32 1.0, %v2844_v21 }
 0x3c9   :  { %2303 = vmatpush3.bf16.msra.mxu0 %v2705_v13  ;;  %1839 = vmatprep.mubr.msk.f32.mxu0 %vm2640_vm0, %v2641_v1 }
 0x3ca   :  { %2304 = vmatprep.subr.bf16.mxu0 %v2639_v0  ;;  %v395_v23 = vmul.f32 %v394_v22, %v2844_v21 }
 0x3cc   :  { %v396_v25 = vmul.f32 %v395_v23, %v2776_v46 }
 0x3cd   :  { %2306 = vmatpush3.bf16.msra.mxu0 %v2708_v14 }
 0x3ce   :  { %2307 = vmatprep.subr.bf16.mxu0 %v2639_v0 }
 0x3d1   :  { %2309 = vmatpush3.bf16.msra.mxu0 %v2714_v19 }
 0x3d2   :  { %2310 = vmatprep.subr.bf16.mxu0 %v2639_v0 }
 0x3d5   :  { %2312 = vmatpush3.bf16.msra.mxu0 %v2720_v24 }
 0x3d6   :  { %2313 = vmatprep.subr.bf16.mxu0 %v2639_v0 }
 0x3d9   :  { %2315 = vmatpush3.bf16.msra.mxu0 %v2726_v29 }
 0x3da   :  { %2316 = vmatprep.subr.bf16.mxu0 %v2639_v0 }
 0x3dd   :  { %2318 = vmatpush3.bf16.msra.mxu0 %v2732_v34 }
 0x3de   :  { %2319 = vmatprep.subr.bf16.mxu0 %v2639_v0 }
 0x3e1   :  { %2321 = vmatpush3.bf16.msra.mxu0 %v2738_v39 }
 0x3e2   :  { %2322 = vmatprep.subr.bf16.mxu0 %v2639_v0 }
 0x3e5   :  { %2324 = vmatpush3.bf16.msra.mxu0 %v2744_v42 }
 0x3e6   :  { %2349 = vmatprep.subr.bf16.mxu0 %v2639_v0 }
 0x49b   :  { %v463_v26 = vpop.f32.mrb[4].mxu0 }
 0x49c   :  { %v2868_v27 = vadd.f32 %v463_v26, %v396_v25  ;;  %v1771_v28 = vpop.f32.mrb[5].mxu0 }
 0x49e   :  { %v467_v30 = vmul.f32 0.125, %v2868_v27 }
 0x4a0   :  { %v468_v31 = vadd.f32 %v467_v30, %v2844_v21 }
 0x4a2   :  { %1805 = vmatmul.mubr.f32.vlgmr.msra.gmra.mrb[4].mxu1 %v468_v31  ;;  %v469_v32 = vsub.f32 1.0, %v468_v31 }
 0x4a3   :  { %2327 = vmatpush3.bf16.msra.mxu1 %v2705_v13  ;;  %1874 = vmatprep.mubr.msk.f32.mxu1 %vm2640_vm0, %v2641_v1 }
 0x4a4   :  { %2328 = vmatprep.subr.bf16.mxu1 %v2639_v0  ;;  %v470_v33 = vmul.f32 %v469_v32, %v468_v31 }
 0x4a6   :  { %v471_v35 = vmul.f32 %v470_v33, %v2776_v46 }
 0x4a7   :  { %2330 = vmatpush3.bf16.msra.mxu1 %v2708_v14 }
 0x4a8   :  { %2331 = vmatprep.subr.bf16.mxu1 %v2639_v0 }
 0x4ab   :  { %2333 = vmatpush3.bf16.msra.mxu1 %v2714_v19 }
 0x4ac   :  { %2334 = vmatprep.subr.bf16.mxu1 %v2639_v0 }
 0x4af   :  { %2336 = vmatpush3.bf16.msra.mxu1 %v2720_v24 }
 0x4b0   :  { %2337 = vmatprep.subr.bf16.mxu1 %v2639_v0 }
 0x4b3   :  { %2339 = vmatpush3.bf16.msra.mxu1 %v2726_v29 }
 0x4b4   :  { %2340 = vmatprep.subr.bf16.mxu1 %v2639_v0 }
 0x4b7   :  { %2342 = vmatpush3.bf16.msra.mxu1 %v2732_v34 }
 0x4b8   :  { %2343 = vmatprep.subr.bf16.mxu1 %v2639_v0 }
 0x4bb   :  { %2345 = vmatpush3.bf16.msra.mxu1 %v2738_v39 }
 0x4bc   :  { %2346 = vmatprep.subr.bf16.mxu1 %v2639_v0 }
 0x4bf   :  { %2348 = vmatpush3.bf16.msra.mxu1 %v2744_v42 }
 0x4c0   :  { %2373 = vmatprep.subr.bf16.mxu1 %v2639_v0 }
 0x575   :  { %v538_v36 = vpop.f32.mrb[4].mxu1 }
 0x576   :  { %v539_v37 = vadd.f32 %v538_v36, %v471_v35  ;;  %v1806_v38 = vpop.f32.mrb[5].mxu1 }
 0x578   :  { %v542_v40 = vmul.f32 0.125, %v539_v37 }
 0x57a   :  { %v543_v41 = vadd.f32 %v542_v40, %v2844_v21 }
 0x57c   :  { %1840 = vmatmul.mubr.f32.vlgmr.msra.gmra.mrb[6].mxu0 %v543_v41  ;;  %v544_v43 = vsub.f32 1.0, %v543_v41 }
 0x57d   :  { %2351 = vmatpush3.bf16.msra.mxu0 %v2705_v13  ;;  %1909 = vmatprep.mubr.msk.f32.mxu0 %vm2640_vm0, %v2641_v1 }
 0x57e   :  { %2352 = vmatprep.subr.bf16.mxu0 %v2639_v0  ;;  %v545_v44 = vmul.f32 %v544_v43, %v543_v41 }
 0x580   :  { %v546_v45 = vmul.f32 %v545_v44, %v2776_v46 }
 0x581   :  { %2354 = vmatpush3.bf16.msra.mxu0 %v2708_v14 }
 0x582   :  { %2355 = vmatprep.subr.bf16.mxu0 %v2639_v0 }
 0x585   :  { %2357 = vmatpush3.bf16.msra.mxu0 %v2714_v19 }
 0x586   :  { %2358 = vmatprep.subr.bf16.mxu0 %v2639_v0 }
 0x589   :  { %2360 = vmatpush3.bf16.msra.mxu0 %v2720_v24 }
 0x58a   :  { %2361 = vmatprep.subr.bf16.mxu0 %v2639_v0 }
 0x58d   :  { %2363 = vmatpush3.bf16.msra.mxu0 %v2726_v29 }
 0x58e   :  { %2364 = vmatprep.subr.bf16.mxu0 %v2639_v0 }
 0x591   :  { %2366 = vmatpush3.bf16.msra.mxu0 %v2732_v34 }
 0x592   :  { %2367 = vmatprep.subr.bf16.mxu0 %v2639_v0 }
 0x595   :  { %2369 = vmatpush3.bf16.msra.mxu0 %v2738_v39 }
 0x596   :  { %2370 = vmatprep.subr.bf16.mxu0 %v2639_v0 }
 0x599   :  { %2372 = vmatpush3.bf16.msra.mxu0 %v2744_v42 }
 0x59a   :  { %2397 = vmatprep.subr.bf16.mxu0 %v2639_v0 }
 0x64f   :  { %v613_v47 = vpop.f32.mrb[6].mxu0 }
 0x650   :  { %v614_v48 = vadd.f32 %v613_v47, %v546_v45  ;;  %v1841_v49 = vpop.f32.mrb[7].mxu0 }
 0x652   :  { %v617_v50 = vmul.f32 0.25, %v614_v48  ;;  %v692_v53 = vadd.f32 %v614_v48, %v539_v37 }
 0x654   :  { %v618_v51 = vadd.f32 %v617_v50, %v2844_v21  ;;  %v693_v55 = vmul.f32 2.0, %v692_v53 }
 0x656   :  { %1875 = vmatmul.mubr.f32.vlgmr.msra.gmra.mrb[6].mxu1 %v618_v51  ;;  %v619_v52 = vsub.f32 1.0, %v618_v51  ;;  %v694_v59 = vadd.f32 %v693_v55, %v2868_v27 }
 0x657   :  { %2375 = vmatpush3.bf16.msra.mxu1 %v2705_v13  ;;  %1944 = vmatprep.mubr.msk.f32.mxu1 %vm2640_vm0, %v2641_v1 }
 0x658   :  { %2376 = vmatprep.subr.bf16.mxu1 %v2639_v0  ;;  %v620_v54 = vmul.f32 %v619_v52, %v618_v51 }
 0x65a   :  { %v621_v56 = vmul.f32 %v620_v54, %v2776_v46 }
 0x65b   :  { %2378 = vmatpush3.bf16.msra.mxu1 %v2708_v14 }
 0x65c   :  { %2379 = vmatprep.subr.bf16.mxu1 %v2639_v0 }
 0x65f   :  { %2381 = vmatpush3.bf16.msra.mxu1 %v2714_v19 }
 0x660   :  { %2382 = vmatprep.subr.bf16.mxu1 %v2639_v0 }
 0x663   :  { %2384 = vmatpush3.bf16.msra.mxu1 %v2720_v24 }
 0x664   :  { %2385 = vmatprep.subr.bf16.mxu1 %v2639_v0 }
 0x667   :  { %2387 = vmatpush3.bf16.msra.mxu1 %v2726_v29 }
 0x668   :  { %2388 = vmatprep.subr.bf16.mxu1 %v2639_v0 }
 0x66b   :  { %2390 = vmatpush3.bf16.msra.mxu1 %v2732_v34 }
 0x66c   :  { %2391 = vmatprep.subr.bf16.mxu1 %v2639_v0 }
 0x66f   :  { %2393 = vmatpush3.bf16.msra.mxu1 %v2738_v39 }
 0x670   :  { %2394 = vmatprep.subr.bf16.mxu1 %v2639_v0 }
 0x673   :  { %2396 = vmatpush3.bf16.msra.mxu1 %v2744_v42 }
 0x674   :  { %2421 = vmatprep.subr.bf16.mxu1 %v2639_v0 }
 0x729   :  { %v688_v57 = vpop.f32.mrb[6].mxu1 }
 0x72a   :  { %v689_v58 = vadd.f32 %v688_v57, %v621_v56  ;;  %v1876_v60 = vpop.f32.mrb[7].mxu1 }
 0x72c   :  { %v695_v61 = vadd.f32 %v694_v59, %v689_v58 }
 0x72e   :  { %v696_v62 = vmul.f32 0.041666668, %v695_v61 }
 0x730   :  { %v2933_v63 = vadd.f32 %v696_v62, %v2844_v21 }
 0x732   :  { %1910 = vmatmul.mubr.f32.vlgmr.msra.gmra.mrb[8].mxu0 %v2933_v63  ;;  %v698_v2 = vsub.f32 1.0, %v2933_v63 }
 0x733   :  { %2399 = vmatpush3.bf16.msra.mxu0 %v2705_v13  ;;  %1979 = vmatprep.mubr.msk.f32.mxu0 %vm2640_vm0, %v2641_v1 }
 0x734   :  { %2400 = vmatprep.subr.bf16.mxu0 %v2639_v0  ;;  %v699_v3 = vmul.f32 %v698_v2, %v2933_v63 }
 0x736   :  { %v700_v4 = vmul.f32 %v699_v3, %v2776_v46 }
 0x737   :  { %2402 = vmatpush3.bf16.msra.mxu0 %v2708_v14 }
 0x738   :  { %2403 = vmatprep.subr.bf16.mxu0 %v2639_v0 }
 0x73b   :  { %2405 = vmatpush3.bf16.msra.mxu0 %v2714_v19 }
 0x73c   :  { %2406 = vmatprep.subr.bf16.mxu0 %v2639_v0 }
 0x73f   :  { %2408 = vmatpush3.bf16.msra.mxu0 %v2720_v24 }
 0x740   :  { %2409 = vmatprep.subr.bf16.mxu0 %v2639_v0 }
 0x743   :  { %2411 = vmatpush3.bf16.msra.mxu0 %v2726_v29 }
 0x744   :  { %2412 = vmatprep.subr.bf16.mxu0 %v2639_v0 }
 0x747   :  { %2414 = vmatpush3.bf16.msra.mxu0 %v2732_v34 }
 0x748   :  { %2415 = vmatprep.subr.bf16.mxu0 %v2639_v0 }
 0x74b   :  { %2417 = vmatpush3.bf16.msra.mxu0 %v2738_v39 }
 0x74c   :  { %2418 = vmatprep.subr.bf16.mxu0 %v2639_v0 }
 0x74f   :  { %2420 = vmatpush3.bf16.msra.mxu0 %v2744_v42 }
 0x750   :  { %2445 = vmatprep.subr.bf16.mxu0 %v2639_v0 }
 0x805   :  { %v767_v5 = vpop.f32.mrb[8].mxu0 }
 0x806   :  { %v2957_v6 = vadd.f32 %v767_v5, %v700_v4  ;;  %v1911_v7 = vpop.f32.mrb[9].mxu0 }
 0x808   :  { %v771_v8 = vmul.f32 0.125, %v2957_v6 }
 0x80a   :  { %v772_v9 = vadd.f32 %v771_v8, %v2933_v63 }
 0x80c   :  { %1945 = vmatmul.mubr.f32.vlgmr.msra.gmra.mrb[8].mxu1 %v772_v9  ;;  %v773_v10 = vsub.f32 1.0, %v772_v9 }
 0x80d   :  { %2423 = vmatpush3.bf16.msra.mxu1 %v2705_v13  ;;  %2014 = vmatprep.mubr.msk.f32.mxu1 %vm2640_vm0, %v2641_v1 }
 0x80e   :  { %2424 = vmatprep.subr.bf16.mxu1 %v2639_v0  ;;  %v774_v11 = vmul.f32 %v773_v10, %v772_v9 }
 0x810   :  { %v775_v12 = vmul.f32 %v774_v11, %v2776_v46 }
 0x811   :  { %2426 = vmatpush3.bf16.msra.mxu1 %v2708_v14 }
 0x812   :  { %2427 = vmatprep.subr.bf16.mxu1 %v2639_v0 }
 0x815   :  { %2429 = vmatpush3.bf16.msra.mxu1 %v2714_v19 }
 0x816   :  { %2430 = vmatprep.subr.bf16.mxu1 %v2639_v0 }
 0x819   :  { %2432 = vmatpush3.bf16.msra.mxu1 %v2720_v24 }
 0x81a   :  { %2433 = vmatprep.subr.bf16.mxu1 %v2639_v0 }
 0x81d   :  { %2435 = vmatpush3.bf16.msra.mxu1 %v2726_v29 }
 0x81e   :  { %2436 = vmatprep.subr.bf16.mxu1 %v2639_v0 }
 0x821   :  { %2438 = vmatpush3.bf16.msra.mxu1 %v2732_v34 }
 0x822   :  { %2439 = vmatprep.subr.bf16.mxu1 %v2639_v0 }
 0x825   :  { %2441 = vmatpush3.bf16.msra.mxu1 %v2738_v39 }
 0x826   :  { %2442 = vmatprep.subr.bf16.mxu1 %v2639_v0 }
 0x829   :  { %2444 = vmatpush3.bf16.msra.mxu1 %v2744_v42 }
 0x82a   :  { %2469 = vmatprep.subr.bf16.mxu1 %v2639_v0 }
 0x8df   :  { %v842_v15 = vpop.f32.mrb[8].mxu1 }
 0x8e0   :  { %v843_v16 = vadd.f32 %v842_v15, %v775_v12  ;;  %v1946_v17 = vpop.f32.mrb[9].mxu1 }
 0x8e2   :  { %v846_v18 = vmul.f32 0.125, %v843_v16 }
 0x8e4   :  { %v847_v20 = vadd.f32 %v846_v18, %v2933_v63 }
 0x8e6   :  { %1980 = vmatmul.mubr.f32.vlgmr.msra.gmra.mrb[10].mxu0 %v847_v20  ;;  %v848_v21 = vsub.f32 1.0, %v847_v20 }
 0x8e7   :  { %2447 = vmatpush3.bf16.msra.mxu0 %v2705_v13  ;;  %2049 = vmatprep.mubr.msk.f32.mxu0 %vm2640_vm0, %v2641_v1 }
 0x8e8   :  { %2448 = vmatprep.subr.bf16.mxu0 %v2639_v0  ;;  %v849_v22 = vmul.f32 %v848_v21, %v847_v20 }
 0x8ea   :  { %v850_v23 = vmul.f32 %v849_v22, %v2776_v46 }
 0x8eb   :  { %2450 = vmatpush3.bf16.msra.mxu0 %v2708_v14 }
 0x8ec   :  { %2451 = vmatprep.subr.bf16.mxu0 %v2639_v0 }
 0x8ef   :  { %2453 = vmatpush3.bf16.msra.mxu0 %v2714_v19 }
 0x8f0   :  { %2454 = vmatprep.subr.bf16.mxu0 %v2639_v0 }
 0x8f3   :  { %2456 = vmatpush3.bf16.msra.mxu0 %v2720_v24 }
 0x8f4   :  { %2457 = vmatprep.subr.bf16.mxu0 %v2639_v0 }
 0x8f7   :  { %2459 = vmatpush3.bf16.msra.mxu0 %v2726_v29 }
 0x8f8   :  { %2460 = vmatprep.subr.bf16.mxu0 %v2639_v0 }
 0x8fb   :  { %2462 = vmatpush3.bf16.msra.mxu0 %v2732_v34 }
 0x8fc   :  { %2463 = vmatprep.subr.bf16.mxu0 %v2639_v0 }
 0x8ff   :  { %2465 = vmatpush3.bf16.msra.mxu0 %v2738_v39 }
 0x900   :  { %2466 = vmatprep.subr.bf16.mxu0 %v2639_v0 }
 0x903   :  { %2468 = vmatpush3.bf16.msra.mxu0 %v2744_v42 }
 0x904   :  { %2493 = vmatprep.subr.bf16.mxu0 %v2639_v0 }
 0x9b9   :  { %v917_v25 = vpop.f32.mrb[10].mxu0 }
 0x9ba   :  { %v918_v26 = vadd.f32 %v917_v25, %v850_v23  ;;  %v1981_v27 = vpop.f32.mrb[11].mxu0 }
 0x9bc   :  { %v921_v28 = vmul.f32 0.25, %v918_v26  ;;  %v996_v32 = vadd.f32 %v918_v26, %v843_v16 }
 0x9be   :  { %v922_v30 = vadd.f32 %v921_v28, %v2933_v63  ;;  %v997_v35 = vmul.f32 2.0, %v996_v32 }
 0x9c0   :  { %2015 = vmatmul.mubr.f32.vlgmr.msra.gmra.mrb[10].mxu1 %v922_v30  ;;  %v923_v31 = vsub.f32 1.0, %v922_v30  ;;  %v998_v40 = vadd.f32 %v997_v35, %v2957_v6 }
 0x9c1   :  { %2471 = vmatpush3.bf16.msra.mxu1 %v2705_v13  ;;  %2084 = vmatprep.mubr.msk.f32.mxu1 %vm2640_vm0, %v2641_v1 }
 0x9c2   :  { %2472 = vmatprep.subr.bf16.mxu1 %v2639_v0  ;;  %v924_v33 = vmul.f32 %v923_v31, %v922_v30 }
 0x9c4   :  { %v925_v36 = vmul.f32 %v924_v33, %v2776_v46 }
 0x9c5   :  { %2474 = vmatpush3.bf16.msra.mxu1 %v2708_v14 }
 0x9c6   :  { %2475 = vmatprep.subr.bf16.mxu1 %v2639_v0 }
 0x9c9   :  { %2477 = vmatpush3.bf16.msra.mxu1 %v2714_v19 }
 0x9ca   :  { %2478 = vmatprep.subr.bf16.mxu1 %v2639_v0 }
 0x9cd   :  { %2480 = vmatpush3.bf16.msra.mxu1 %v2720_v24 }
 0x9ce   :  { %2481 = vmatprep.subr.bf16.mxu1 %v2639_v0 }
 0x9d1   :  { %2483 = vmatpush3.bf16.msra.mxu1 %v2726_v29 }
 0x9d2   :  { %2484 = vmatprep.subr.bf16.mxu1 %v2639_v0 }
 0x9d5   :  { %2486 = vmatpush3.bf16.msra.mxu1 %v2732_v34 }
 0x9d6   :  { %2487 = vmatprep.subr.bf16.mxu1 %v2639_v0 }
 0x9d9   :  { %2489 = vmatpush3.bf16.msra.mxu1 %v2738_v39 }
 0x9da   :  { %2490 = vmatprep.subr.bf16.mxu1 %v2639_v0 }
 0x9dd   :  { %2492 = vmatpush3.bf16.msra.mxu1 %v2744_v42 }
 0x9de   :  { %2517 = vmatprep.subr.bf16.mxu1 %v2639_v0 }
 0xa93   :  { %v992_v37 = vpop.f32.mrb[10].mxu1 }
 0xa94   :  { %v993_v38 = vadd.f32 %v992_v37, %v925_v36  ;;  %v2016_v41 = vpop.f32.mrb[11].mxu1 }
 0xa96   :  { %v999_v43 = vadd.f32 %v998_v40, %v993_v38 }
 0xa98   :  { %v1000_v44 = vmul.f32 0.041666668, %v999_v43 }
 0xa9a   :  { %v3022_v45 = vadd.f32 %v1000_v44, %v2933_v63 }
 0xa9c   :  { %2050 = vmatmul.mubr.f32.vlgmr.msra.gmra.mrb[12].mxu0 %v3022_v45  ;;  %v1002_v47 = vsub.f32 1.0, %v3022_v45 }
 0xa9d   :  { %2495 = vmatpush3.bf16.msra.mxu0 %v2705_v13  ;;  %2119 = vmatprep.mubr.msk.f32.mxu0 %vm2640_vm0, %v2641_v1 }
 0xa9e   :  { %2496 = vmatprep.subr.bf16.mxu0 %v2639_v0  ;;  %v1003_v48 = vmul.f32 %v1002_v47, %v3022_v45 }
 0xaa0   :  { %v1004_v49 = vmul.f32 %v1003_v48, %v2776_v46 }
 0xaa1   :  { %2498 = vmatpush3.bf16.msra.mxu0 %v2708_v14 }
 0xaa2   :  { %2499 = vmatprep.subr.bf16.mxu0 %v2639_v0 }
 0xaa5   :  { %2501 = vmatpush3.bf16.msra.mxu0 %v2714_v19 }
 0xaa6   :  { %2502 = vmatprep.subr.bf16.mxu0 %v2639_v0 }
 0xaa9   :  { %2504 = vmatpush3.bf16.msra.mxu0 %v2720_v24 }
 0xaaa   :  { %2505 = vmatprep.subr.bf16.mxu0 %v2639_v0 }
 0xaad   :  { %2507 = vmatpush3.bf16.msra.mxu0 %v2726_v29 }
 0xaae   :  { %2508 = vmatprep.subr.bf16.mxu0 %v2639_v0 }
 0xab1   :  { %2510 = vmatpush3.bf16.msra.mxu0 %v2732_v34 }
 0xab2   :  { %2511 = vmatprep.subr.bf16.mxu0 %v2639_v0 }
 0xab5   :  { %2513 = vmatpush3.bf16.msra.mxu0 %v2738_v39 }
 0xab6   :  { %2514 = vmatprep.subr.bf16.mxu0 %v2639_v0 }
 0xab9   :  { %2516 = vmatpush3.bf16.msra.mxu0 %v2744_v42 }
 0xb6f   :  { %v1071_v50 = vpop.f32.mrb[12].mxu0 }
 0xb70   :  { %v1072_v51 = vadd.f32 %v1071_v50, %v1004_v49  ;;  %v2051_v52 = vpop.f32.mrb[13].mxu0 }
 0xb72   :  { %v1075_v53 = vmul.f32 0.125, %v1072_v51 }
 0xb74   :  { %v1076_v54 = vadd.f32 %v1075_v53, %v3022_v45 }
 0xb76   :  { %2085 = vmatmul.mubr.f32.vlgmr.msra.gmra.mrb[12].mxu1 %v1076_v54 }
 0xb77   :  { %2519 = vmatpush3.bf16.msra.mxu1 %v2705_v13  ;;  %2154 = vmatprep.mubr.msk.f32.mxu1 %vm2640_vm0, %v2641_v1  ;;  %v1077_v1 = vsub.f32 1.0, %v1076_v54 }
 0xb78   :  { %2520 = vmatprep.subr.bf16.mxu1 %v2639_v0 }
 0xb79   :  { %v1078_v13 = vmul.f32 %v1077_v1, %v1076_v54 }
 0xb7b   :  { %2522 = vmatpush3.bf16.msra.mxu1 %v2708_v14  ;;  %v1079_v14 = vmul.f32 %v1078_v13, %v2776_v46 }
 0xb7c   :  { %2523 = vmatprep.subr.bf16.mxu1 %v2639_v0 }
 0xb7f   :  { %2525 = vmatpush3.bf16.msra.mxu1 %v2714_v19 }
 0xb80   :  { %2526 = vmatprep.subr.bf16.mxu1 %v2639_v0 }
 0xb83   :  { %2528 = vmatpush3.bf16.msra.mxu1 %v2720_v24 }
 0xb84   :  { %2529 = vmatprep.subr.bf16.mxu1 %v2639_v0 }
 0xb87   :  { %2531 = vmatpush3.bf16.msra.mxu1 %v2726_v29 }
 0xb88   :  { %2532 = vmatprep.subr.bf16.mxu1 %v2639_v0 }
 0xb8b   :  { %2534 = vmatpush3.bf16.msra.mxu1 %v2732_v34 }
 0xb8c   :  { %2535 = vmatprep.subr.bf16.mxu1 %v2639_v0 }
 0xb8f   :  { %2537 = vmatpush3.bf16.msra.mxu1 %v2738_v39 }
 0xb90   :  { %2538 = vmatprep.subr.bf16.mxu1 %v2639_v0 }
 0xb93   :  { %2540 = vmatpush3.bf16.msra.mxu1 %v2744_v42 }
 0xc49   :  { %v1146_v19 = vpop.f32.mrb[12].mxu1 }
 0xc4a   :  { %v1147_v24 = vadd.f32 %v1146_v19, %v1079_v14  ;;  %v2086_v55 = vpop.f32.mrb[13].mxu1 }
 0xc4c   :  { %v1150_v29 = vmul.f32 0.125, %v1147_v24 }
 0xc4e   :  { %v1151_v56 = vadd.f32 %v1150_v29, %v3022_v45 }
 0xc50   :  { %2120 = vmatmul.mubr.f32.vlgmr.msra.gmra.mrb[14].mxu0 %v1151_v56  ;;  %v1152_v34 = vsub.f32 1.0, %v1151_v56 }
 0xc52   :  { %v1153_v57 = vmul.f32 %v1152_v34, %v1151_v56 }
 0xc54   :  { %v1154_v58 = vmul.f32 %v1153_v57, %v2776_v46 }
 0xd23   :  { %v1221_v39 = vpop.f32.mrb[14].mxu0 }
 0xd24   :  { %v1222_v59 = vadd.f32 %v1221_v39, %v1154_v58  ;;  %v2121_v0 = vpop.f32.mrb[15].mxu0 }
 0xd26   :  { %v1225_v60 = vmul.f32 0.25, %v1222_v59  ;;  %v1300_v62 = vadd.f32 %v1222_v59, %v1147_v24 }
 0xd28   :  { %v1226_v42 = vadd.f32 %v1225_v60, %v3022_v45  ;;  %v1301_v2 = vmul.f32 2.0, %v1300_v62 }
 0xd2a   :  { %2155 = vmatmul.mubr.f32.vlgmr.msra.gmra.mrb[14].mxu1 %v1226_v42  ;;  %v1227_v61 = vsub.f32 1.0, %v1226_v42  ;;  %v1302_v6 = vadd.f32 %v1301_v2, %v1072_v51 }
 0xd2c   :  { %v1228_v63 = vmul.f32 %v1227_v61, %v1226_v42 }
 0xd2e   :  { %v1229_v3 = vmul.f32 %v1228_v63, %v2776_v46 }
 0xdfd   :  { %v1296_v4 = vpop.f32.mrb[14].mxu1 }
 0xdfe   :  { %v1297_v5 = vadd.f32 %v1296_v4, %v1229_v3  ;;  %v2156_v7 = vpop.f32.mrb[15].mxu1 }
 0xe00   :  { %v1303_v8 = vadd.f32 %v1302_v6, %v1297_v5 }
 0xe02   :  { %v1304_v9 = vmul.f32 0.041666668, %v1303_v8 }
 0xe04   :  { %v1305_v10 = vadd.f32 %v1304_v9, %v3022_v45 }
 0xe06   :  { %1306 = vst [vmem:[#allocation9] sm:$0xff] %v1305_v10 }
 0xe07   :  { %2615 = shalt.err (!%p2612_p9)
}
 0xe08   :  { %s2616_s26 = scalar_lea.hbm %s3084_s3, 128 }
 0xe09   :  { %p2617_p10 = scmp.ne.s32.totalorder %s3084_s3, %s2616_s26  ;;  %p2620_p11 = scmp.lt.u32.totalorder %s2616_s26, %s3084_s3 }
 0xe0b   :  { %p2622_p12 = pnand %p2620_p11, %p2617_p10 }
 0xe0d   :  { %2625 = shalt.err (!%p2622_p12)
}
 0xe0e   :  { %1316 = dma.vmem_to_hbm [thread:$0]  %s1314_s22, 128, %s3084_s3, [#allocation4]  }
 0xe0f   :  { %2632 = dma.done.wait [#allocation4], 128  }
 0xe10   :  { %2633 = vsyncadd [#allocation4], 4294967168 }
 0xe11   :  { %1320 = vsyncpa [#allocation3], 1 }
 0xe12   :  { %1321 = vsyncpa [#allocation8], 1 }
 0xe13   :  { %1322 = vsyncpa [#allocation4], 1 }
 0xe14   :  { %1323 = vsyncpa [#allocation5], 1 }

</bundles_post_ra>
